<compile_context>
chip_gen: v6e
topology: v6e:2x2x1
jax: 0.10.0
libtpu: 0.0.40
codegen_flags: <defaults>
</compile_context>

<pallas_src>
import functools
import math

import jax
import jax.numpy as jnp
from jax.experimental import pallas as pl
from jax.experimental.pallas import tpu as pltpu

_HALF_LOG_2PI = 0.5 * math.log(2.0 * math.pi)
_TARGET_Z = 7.0  # asymptotic series is ~1e-9 accurate once z >= 7


def _cdiv(a, b):
    return -(-a // b)


def _digamma(x, n_shift):
    """digamma(x) for x >= (TARGET_Z - n_shift), recurrence + asymptotic series.

    EUP cost ~3-4 ops/element: 1 log, 1 divide (common-denominator shift),
    1 reciprocal. Recurrence products/sums run on the VPU.
    """
    z = x
    if n_shift > 0:
        num = jnp.zeros_like(x)
        den = jnp.ones_like(x)
        for _ in range(n_shift):
            num = num * z + den      # running sum of reciprocals, common denom
            den = den * z
            z = z + 1.0
        shift = num / den            # single divide instead of n reciprocals
    else:
        shift = 0.0
    zinv = 1.0 / z
    zinv2 = zinv * zinv
    series = -0.5 * zinv - zinv2 * (
        1.0 / 12.0 - zinv2 * (1.0 / 120.0 - zinv2 * (1.0 / 252.0)))
    return jnp.log(z) + series - shift


def _digamma_lgamma(x, n_shift):
    """Fused digamma(x), lgamma(x) for x >= (TARGET_Z - n_shift).

    Shares log(z) and 1/z; lgamma shift is a single log of the VPU-accumulated
    product (sum of logs == log of product).
    """
    z = x
    if n_shift > 0:
        num = jnp.zeros_like(x)
        den = jnp.ones_like(x)
        for _ in range(n_shift):
            num = num * z + den
            den = den * z            # den == prod of the shifted arguments
            z = z + 1.0
        dig_shift = num / den
        lgm_shift = jnp.log(den)     # one log instead of n logs
    else:
        dig_shift = 0.0
        lgm_shift = 0.0
    zinv = 1.0 / z
    zinv2 = zinv * zinv
    log_z = jnp.log(z)
    dig_series = -0.5 * zinv - zinv2 * (
        1.0 / 12.0 - zinv2 * (1.0 / 120.0 - zinv2 * (1.0 / 252.0)))
    lgm_series = zinv * (
        1.0 / 12.0
        + zinv2 * (-1.0 / 360.0 + zinv2 * (1.0 / 1260.0 + zinv2 * (-1.0 / 1680.0))))
    digamma = log_z + dig_series - dig_shift
    lgamma = (z - 0.5) * log_z - z + _HALF_LOG_2PI + lgm_series - lgm_shift
    return digamma, lgamma


def _edl_digamma_kernel(coef_ref, out_ref, tgt_ref, loss_ref, *,
                        num_classes, one_hot, n_shift_full, n_shift_sum):
    # (C, TN) tiles: classes on the sublane axis, batch on the 128-lane axis.
    x = out_ref[...].astype(jnp.float32)
    y = tgt_ref[...].astype(jnp.float32)
    coef = coef_ref[0]

    evidence = jnp.maximum(x, 0.0)
    alpha = evidence + 1.0
    s = jnp.sum(alpha, axis=0, keepdims=True)                # (1, TN), s >= C

    lgamma_c = float(math.lgamma(num_classes))
    dig_s = _digamma(s, n_shift_sum)

    if one_hot:
        # kl_alpha = where(y == 1, 1, alpha): reuse the alpha transcendentals.
        dig_a, lgm_a = _digamma_lgamma(alpha, n_shift_full)
        a_term = jnp.sum(y * (dig_s - dig_a), axis=0, keepdims=True)
        sum_kl = s - jnp.sum(y * (alpha - 1.0), axis=0, keepdims=True)
        dig_skl, lgm_skl = _digamma_lgamma(sum_kl, n_shift_sum)
        is_hot = y > 0.5
        lgm_kl = jnp.where(is_hot, 0.0, lgm_a)               # lgamma(kl_alpha)
        kl_m1 = jnp.where(is_hot, 0.0, alpha - 1.0)          # kl_alpha - 1
        first = lgm_skl - jnp.sum(lgm_kl, axis=0, keepdims=True) - lgamma_c
        # (kl_alpha - 1) == 0 where y == 1, so dig_a stands in for digamma(kl_alpha).
        second = jnp.sum(kl_m1 * (dig_a - dig_skl), axis=0, keepdims=True)
    else:
        dig_a = _digamma(alpha, n_shift_full)
        a_term = jnp.sum(y * (dig_s - dig_a), axis=0, keepdims=True)
        kl_alpha = (alpha - 1.0) * (1.0 - y) + 1.0
        sum_kl = jnp.sum(kl_alpha, axis=0, keepdims=True)
        dig_kl, lgm_kl = _digamma_lgamma(kl_alpha, n_shift_full)
        dig_skl, lgm_skl = _digamma_lgamma(sum_kl, n_shift_sum)
        first = lgm_skl - jnp.sum(lgm_kl, axis=0, keepdims=True) - lgamma_c
        second = jnp.sum((kl_alpha - 1.0) * (dig_kl - dig_skl),
                         axis=0, keepdims=True)

    # Lane-dense per-sample loss for this tile (mean is taken in the wrapper).
    loss_ref[...] = a_term + coef * (first + second)


def edl_digamma_loss(output, target, epoch_num, annealing_step, num_classes,
                     *, one_hot_targets=True, tile_n=None):
    """Pallas-backed EDLDigammaLoss.forward (weights=None).

    Set one_hot_targets=False for soft labels (adds one transcendental pass).
    """
    # TODO(synk): optional per-class `weights` argument not implemented; this
    # matches the module's default weights=None path.
    n, c = output.shape
    assert target.shape == (n, c)

    if tile_n is None:
        # Keep a single input tile <= ~1 MiB (f32): 2 inputs x 2 pipeline
        # buffers ~ 4 MiB, leaving headroom for temporaries (v7x scoped VMEM).
        tile_n = max(128, min(4096, ((1 << 20) // (4 * c)) // 128 * 128))
        tile_n = min(tile_n, _cdiv(n, 128) * 128)
    n_pad = _cdiv(n, tile_n) * tile_n
    num_tiles = n_pad // tile_n

    # (C, N) layout: batch on the lane axis (lane-dense for small num_classes).
    # Zero-padded columns are sliced off before the mean, so they add no bias.
    out_t = jnp.pad(output.T, ((0, 0), (0, n_pad - n)))
    tgt_t = jnp.pad(target.T, ((0, 0), (0, n_pad - n)))

    coef = jnp.asarray([min(1.0, float(epoch_num) / float(annealing_step))],
                       dtype=jnp.float32)

    # alpha, kl_alpha >= 1; S, sum_kl >= num_classes -> shorter static shift.
    n_shift_full = max(0, int(math.ceil(_TARGET_Z - 1.0)))
    n_shift_sum = max(0, int(math.ceil(_TARGET_Z - float(num_classes))))

    kernel = functools.partial(
        _edl_digamma_kernel, num_classes=num_classes, one_hot=one_hot_targets,
        n_shift_full=n_shift_full, n_shift_sum=n_shift_sum)

    transc_per_elem = 8 if one_hot_targets else 12
    per_sample = pl.pallas_call(
        kernel,
        out_shape=jax.ShapeDtypeStruct((1, n_pad), jnp.float32),
        grid=(num_tiles,),
        in_specs=[
            pl.BlockSpec(memory_space=pltpu.MemorySpace.SMEM),       # coef
            pl.BlockSpec((c, tile_n), lambda i: (0, i)),             # logits.T
            pl.BlockSpec((c, tile_n), lambda i: (0, i)),             # targets.T
        ],
        out_specs=pl.BlockSpec((1, tile_n), lambda i: (0, i)),
        compiler_params=pltpu.CompilerParams(
            dimension_semantics=("parallel",)),
        cost_estimate=pl.CostEstimate(
            flops=int(60 * n_pad * c),
            transcendentals=int(transc_per_elem * n_pad * c),
            bytes_accessed=int(out_t.size * out_t.dtype.itemsize
                               + tgt_t.size * tgt_t.dtype.itemsize
                               + 4 * n_pad)),
    )(coef, out_t, tgt_t)

    return jnp.sum(per_sample[0, :n]) / n


def _reference_loss(output, target, epoch_num, annealing_step, num_classes):
    """Pure-JAX reference mirroring the PyTorch module."""
    from jax.scipy.special import digamma, gammaln

    output = output.astype(jnp.float32)
    target = target.astype(jnp.float32)
    evidence = jnp.maximum(output, 0.0)
    alpha = evidence + 1.0
    s = jnp.sum(alpha, axis=1, keepdims=True)
    a_term = jnp.sum(target * (digamma(s) - digamma(alpha)), axis=1, keepdims=True)
    kl_alpha = (alpha - 1.0) * (1.0 - target) + 1.0
    sum_kl = jnp.sum(kl_alpha, axis=1, keepdims=True)
    first = (gammaln(sum_kl)
             - jnp.sum(gammaln(kl_alpha), axis=1, keepdims=True)
             - gammaln(jnp.float32(num_classes)))
    second = jnp.sum((kl_alpha - 1.0) * (digamma(kl_alpha) - digamma(sum_kl)),
                     axis=1, keepdims=True)
    coef = min(1.0, float(epoch_num) / float(annealing_step))
    return jnp.mean(a_term + coef * (first + second))


if __name__ == "__main__":
    num_classes = 4
    batch = 8
    annealing_step = 10
    epoch_num = 3

    key = jax.random.PRNGKey(0)
    k_out, k_lbl, k_soft = jax.random.split(key, 3)
    output = jax.random.normal(k_out, (batch, num_classes), dtype=jnp.float32) * 2.0
    labels = jax.random.randint(k_lbl, (batch,), 0, num_classes)
    target = jax.nn.one_hot(labels, num_classes, dtype=jnp.float32)

    # One-hot fast path.
    loss = edl_digamma_loss(output, target, epoch_num, annealing_step, num_classes)
    loss = jax.block_until_ready(loss)
    ref = _reference_loss(output, target, epoch_num, annealing_step, num_classes)
    assert jnp.isfinite(loss)
    assert abs(float(loss) - float(ref)) < 1e-3, (float(loss), float(ref))

    # Generic (soft-label) path, exercising a multi-tile grid (3 tiles of 128).
    n2, c2 = 300, 6
    k1, k2 = jax.random.split(k_soft)
    out2 = jax.random.normal(k1, (n2, c2), dtype=jnp.float32) * 1.5
    tgt2 = jax.nn.softmax(jax.random.normal(k2, (n2, c2), dtype=jnp.float32), axis=-1)
    loss2 = edl_digamma_loss(out2, tgt2, epoch_num, annealing_step, c2,
                             one_hot_targets=False, tile_n=128)
    loss2 = jax.block_until_ready(loss2)
    ref2 = _reference_loss(out2, tgt2, epoch_num, annealing_step, c2)
    assert jnp.isfinite(loss2)
    assert abs(float(loss2) - float(ref2)) < 1e-3, (float(loss2), float(ref2))

    print("KERNEL_OK")
</pallas_src>

<mosaic_0001>
module attributes {stable_mosaic.version = 11 : i64} {
  func.func @_edl_digamma_kernel(%arg0: i32, %arg1: memref<1xf32, #tpu.memory_space<smem>>, %arg2: memref<4x128xf32, #tpu.memory_space<vmem>>, %arg3: memref<4x128xf32, #tpu.memory_space<vmem>>, %arg4: memref<1x128xf32, #tpu.memory_space<vmem>>) attributes {dimension_semantics = [#tpu.dimension_semantics<parallel>], iteration_bounds = array<i64: 1>, scalar_prefetch = 0 : i64, scratch_operands = 0 : i64, tpu.core_type = #tpu.core_type<tc>, window_params = [{transform_indices = @transform_0, window_bounds = array<i64: 1>}, {transform_indices = @transform_1, window_bounds = array<i64: 4, 128>}, {transform_indices = @transform_2, window_bounds = array<i64: 4, 128>}, {transform_indices = @transform_3, window_bounds = array<i64: 1, 128>}]} {
    %c0 = arith.constant 0 : index
    %c0_0 = arith.constant 0 : index
    %0 = vector.load %arg2[%c0, %c0_0] : memref<4x128xf32, #tpu.memory_space<vmem>>, vector<4x128xf32>
    %c0_1 = arith.constant 0 : index
    %c0_2 = arith.constant 0 : index
    %1 = vector.load %arg3[%c0_1, %c0_2] : memref<4x128xf32, #tpu.memory_space<vmem>>, vector<4x128xf32>
    %c0_3 = arith.constant 0 : index
    %2 = memref.load %arg1[%c0_3] : memref<1xf32, #tpu.memory_space<smem>>
    %cst = arith.constant 0.000000e+00 : f32
    %3 = vector.broadcast %cst : f32 to vector<4x128xf32>
    %4 = arith.maximumf %0, %3 : vector<4x128xf32>
    %cst_4 = arith.constant 1.000000e+00 : f32
    %5 = vector.broadcast %cst_4 : f32 to vector<4x128xf32>
    %6 = arith.addf %4, %5 : vector<4x128xf32>
    %cst_5 = arith.constant dense<0.000000e+00> : vector<128xf32>
    %7 = vector.multi_reduction <add>, %6, %cst_5 [0] : vector<4x128xf32> to vector<128xf32>
    %8 = vector.shape_cast %7 : vector<128xf32> to vector<1x128xf32>
    %cst_6 = arith.constant 0.000000e+00 : f32
    %9 = vector.broadcast %cst_6 : f32 to vector<1x128xf32>
    %cst_7 = arith.constant 1.000000e+00 : f32
    %10 = vector.broadcast %cst_7 : f32 to vector<1x128xf32>
    %11 = arith.mulf %9, %8 : vector<1x128xf32>
    %12 = arith.addf %11, %10 : vector<1x128xf32>
    %13 = arith.mulf %10, %8 : vector<1x128xf32>
    %cst_8 = arith.constant 1.000000e+00 : f32
    %14 = vector.broadcast %cst_8 : f32 to vector<1x128xf32>
    %15 = arith.addf %8, %14 : vector<1x128xf32>
    %16 = arith.mulf %12, %15 : vector<1x128xf32>
    %17 = arith.addf %16, %13 : vector<1x128xf32>
    %18 = arith.mulf %13, %15 : vector<1x128xf32>
    %cst_9 = arith.constant 1.000000e+00 : f32
    %19 = vector.broadcast %cst_9 : f32 to vector<1x128xf32>
    %20 = arith.addf %15, %19 : vector<1x128xf32>
    %21 = arith.mulf %17, %20 : vector<1x128xf32>
    %22 = arith.addf %21, %18 : vector<1x128xf32>
    %23 = arith.mulf %18, %20 : vector<1x128xf32>
    %cst_10 = arith.constant 1.000000e+00 : f32
    %24 = vector.broadcast %cst_10 : f32 to vector<1x128xf32>
    %25 = arith.addf %20, %24 : vector<1x128xf32>
    %26 = arith.divf %22, %23 : vector<1x128xf32>
    %cst_11 = arith.constant 1.000000e+00 : f32
    %27 = vector.broadcast %cst_11 : f32 to vector<1x128xf32>
    %28 = arith.divf %27, %25 : vector<1x128xf32>
    %29 = arith.mulf %28, %28 : vector<1x128xf32>
    %cst_12 = arith.constant -5.000000e-01 : f32
    %30 = vector.broadcast %cst_12 : f32 to vector<1x128xf32>
    %31 = arith.mulf %30, %28 : vector<1x128xf32>
    %cst_13 = arith.constant 0.0039682542 : f32
    %32 = vector.broadcast %cst_13 : f32 to vector<1x128xf32>
    %33 = arith.mulf %29, %32 : vector<1x128xf32>
    %cst_14 = arith.constant 0.00833333377 : f32
    %34 = vector.broadcast %cst_14 : f32 to vector<1x128xf32>
    %35 = arith.subf %34, %33 : vector<1x128xf32>
    %36 = arith.mulf %29, %35 : vector<1x128xf32>
    %cst_15 = arith.constant 0.0833333358 : f32
    %37 = vector.broadcast %cst_15 : f32 to vector<1x128xf32>
    %38 = arith.subf %37, %36 : vector<1x128xf32>
    %39 = arith.mulf %29, %38 : vector<1x128xf32>
    %40 = arith.subf %31, %39 : vector<1x128xf32>
    %41 = math.log %25 : vector<1x128xf32>
    %42 = arith.addf %41, %40 : vector<1x128xf32>
    %43 = arith.subf %42, %26 : vector<1x128xf32>
    %cst_16 = arith.constant 0.000000e+00 : f32
    %44 = vector.broadcast %cst_16 : f32 to vector<4x128xf32>
    %cst_17 = arith.constant 1.000000e+00 : f32
    %45 = vector.broadcast %cst_17 : f32 to vector<4x128xf32>
    %46 = arith.mulf %44, %6 : vector<4x128xf32>
    %47 = arith.addf %46, %45 : vector<4x128xf32>
    %48 = arith.mulf %45, %6 : vector<4x128xf32>
    %cst_18 = arith.constant 1.000000e+00 : f32
    %49 = vector.broadcast %cst_18 : f32 to vector<4x128xf32>
    %50 = arith.addf %6, %49 : vector<4x128xf32>
    %51 = arith.mulf %47, %50 : vector<4x128xf32>
    %52 = arith.addf %51, %48 : vector<4x128xf32>
    %53 = arith.mulf %48, %50 : vector<4x128xf32>
    %cst_19 = arith.constant 1.000000e+00 : f32
    %54 = vector.broadcast %cst_19 : f32 to vector<4x128xf32>
    %55 = arith.addf %50, %54 : vector<4x128xf32>
    %56 = arith.mulf %52, %55 : vector<4x128xf32>
    %57 = arith.addf %56, %53 : vector<4x128xf32>
    %58 = arith.mulf %53, %55 : vector<4x128xf32>
    %cst_20 = arith.constant 1.000000e+00 : f32
    %59 = vector.broadcast %cst_20 : f32 to vector<4x128xf32>
    %60 = arith.addf %55, %59 : vector<4x128xf32>
    %61 = arith.mulf %57, %60 : vector<4x128xf32>
    %62 = arith.addf %61, %58 : vector<4x128xf32>
    %63 = arith.mulf %58, %60 : vector<4x128xf32>
    %cst_21 = arith.constant 1.000000e+00 : f32
    %64 = vector.broadcast %cst_21 : f32 to vector<4x128xf32>
    %65 = arith.addf %60, %64 : vector<4x128xf32>
    %66 = arith.mulf %62, %65 : vector<4x128xf32>
    %67 = arith.addf %66, %63 : vector<4x128xf32>
    %68 = arith.mulf %63, %65 : vector<4x128xf32>
    %cst_22 = arith.constant 1.000000e+00 : f32
    %69 = vector.broadcast %cst_22 : f32 to vector<4x128xf32>
    %70 = arith.addf %65, %69 : vector<4x128xf32>
    %71 = arith.mulf %67, %70 : vector<4x128xf32>
    %72 = arith.addf %71, %68 : vector<4x128xf32>
    %73 = arith.mulf %68, %70 : vector<4x128xf32>
    %cst_23 = arith.constant 1.000000e+00 : f32
    %74 = vector.broadcast %cst_23 : f32 to vector<4x128xf32>
    %75 = arith.addf %70, %74 : vector<4x128xf32>
    %76 = arith.divf %72, %73 : vector<4x128xf32>
    %77 = math.log %73 : vector<4x128xf32>
    %cst_24 = arith.constant 1.000000e+00 : f32
    %78 = vector.broadcast %cst_24 : f32 to vector<4x128xf32>
    %79 = arith.divf %78, %75 : vector<4x128xf32>
    %80 = arith.mulf %79, %79 : vector<4x128xf32>
    %81 = math.log %75 : vector<4x128xf32>
    %cst_25 = arith.constant -5.000000e-01 : f32
    %82 = vector.broadcast %cst_25 : f32 to vector<4x128xf32>
    %83 = arith.mulf %82, %79 : vector<4x128xf32>
    %cst_26 = arith.constant 0.0039682542 : f32
    %84 = vector.broadcast %cst_26 : f32 to vector<4x128xf32>
    %85 = arith.mulf %80, %84 : vector<4x128xf32>
    %cst_27 = arith.constant 0.00833333377 : f32
    %86 = vector.broadcast %cst_27 : f32 to vector<4x128xf32>
    %87 = arith.subf %86, %85 : vector<4x128xf32>
    %88 = arith.mulf %80, %87 : vector<4x128xf32>
    %cst_28 = arith.constant 0.0833333358 : f32
    %89 = vector.broadcast %cst_28 : f32 to vector<4x128xf32>
    %90 = arith.subf %89, %88 : vector<4x128xf32>
    %91 = arith.mulf %80, %90 : vector<4x128xf32>
    %92 = arith.subf %83, %91 : vector<4x128xf32>
    %cst_29 = arith.constant -5.95238118E-4 : f32
    %93 = vector.broadcast %cst_29 : f32 to vector<4x128xf32>
    %94 = arith.mulf %80, %93 : vector<4x128xf32>
    %cst_30 = arith.constant 7.93650805E-4 : f32
    %95 = vector.broadcast %cst_30 : f32 to vector<4x128xf32>
    %96 = arith.addf %95, %94 : vector<4x128xf32>
    %97 = arith.mulf %80, %96 : vector<4x128xf32>
    %cst_31 = arith.constant -0.00277777785 : f32
    %98 = vector.broadcast %cst_31 : f32 to vector<4x128xf32>
    %99 = arith.addf %98, %97 : vector<4x128xf32>
    %100 = arith.mulf %80, %99 : vector<4x128xf32>
    %cst_32 = arith.constant 0.0833333358 : f32
    %101 = vector.broadcast %cst_32 : f32 to vector<4x128xf32>
    %102 = arith.addf %101, %100 : vector<4x128xf32>
    %103 = arith.mulf %79, %102 : vector<4x128xf32>
    %104 = arith.addf %81, %92 : vector<4x128xf32>
    %105 = arith.subf %104, %76 : vector<4x128xf32>
    %cst_33 = arith.constant 5.000000e-01 : f32
    %106 = vector.broadcast %cst_33 : f32 to vector<4x128xf32>
    %107 = arith.subf %75, %106 : vector<4x128xf32>
    %108 = arith.mulf %107, %81 : vector<4x128xf32>
    %109 = arith.subf %108, %75 : vector<4x128xf32>
    %cst_34 = arith.constant 0.918938517 : f32
    %110 = vector.broadcast %cst_34 : f32 to vector<4x128xf32>
    %111 = arith.addf %109, %110 : vector<4x128xf32>
    %112 = arith.addf %111, %103 : vector<4x128xf32>
    %113 = arith.subf %112, %77 : vector<4x128xf32>
    %114 = vector.broadcast %43 : vector<1x128xf32> to vector<4x128xf32>
    %115 = arith.subf %114, %105 : vector<4x128xf32>
    %116 = arith.mulf %1, %115 : vector<4x128xf32>
    %cst_35 = arith.constant dense<0.000000e+00> : vector<128xf32>
    %117 = vector.multi_reduction <add>, %116, %cst_35 [0] : vector<4x128xf32> to vector<128xf32>
    %118 = vector.shape_cast %117 : vector<128xf32> to vector<1x128xf32>
    %cst_36 = arith.constant 1.000000e+00 : f32
    %119 = vector.broadcast %cst_36 : f32 to vector<4x128xf32>
    %120 = arith.subf %6, %119 : vector<4x128xf32>
    %121 = arith.mulf %1, %120 : vector<4x128xf32>
    %cst_37 = arith.constant dense<0.000000e+00> : vector<128xf32>
    %122 = vector.multi_reduction <add>, %121, %cst_37 [0] : vector<4x128xf32> to vector<128xf32>
    %123 = vector.shape_cast %122 : vector<128xf32> to vector<1x128xf32>
    %124 = arith.subf %8, %123 : vector<1x128xf32>
    %cst_38 = arith.constant 0.000000e+00 : f32
    %125 = vector.broadcast %cst_38 : f32 to vector<1x128xf32>
    %cst_39 = arith.constant 1.000000e+00 : f32
    %126 = vector.broadcast %cst_39 : f32 to vector<1x128xf32>
    %127 = arith.mulf %125, %124 : vector<1x128xf32>
    %128 = arith.addf %127, %126 : vector<1x128xf32>
    %129 = arith.mulf %126, %124 : vector<1x128xf32>
    %cst_40 = arith.constant 1.000000e+00 : f32
    %130 = vector.broadcast %cst_40 : f32 to vector<1x128xf32>
    %131 = arith.addf %124, %130 : vector<1x128xf32>
    %132 = arith.mulf %128, %131 : vector<1x128xf32>
    %133 = arith.addf %132, %129 : vector<1x128xf32>
    %134 = arith.mulf %129, %131 : vector<1x128xf32>
    %cst_41 = arith.constant 1.000000e+00 : f32
    %135 = vector.broadcast %cst_41 : f32 to vector<1x128xf32>
    %136 = arith.addf %131, %135 : vector<1x128xf32>
    %137 = arith.mulf %133, %136 : vector<1x128xf32>
    %138 = arith.addf %137, %134 : vector<1x128xf32>
    %139 = arith.mulf %134, %136 : vector<1x128xf32>
    %cst_42 = arith.constant 1.000000e+00 : f32
    %140 = vector.broadcast %cst_42 : f32 to vector<1x128xf32>
    %141 = arith.addf %136, %140 : vector<1x128xf32>
    %142 = arith.divf %138, %139 : vector<1x128xf32>
    %143 = math.log %139 : vector<1x128xf32>
    %cst_43 = arith.constant 1.000000e+00 : f32
    %144 = vector.broadcast %cst_43 : f32 to vector<1x128xf32>
    %145 = arith.divf %144, %141 : vector<1x128xf32>
    %146 = arith.mulf %145, %145 : vector<1x128xf32>
    %147 = math.log %141 : vector<1x128xf32>
    %cst_44 = arith.constant -5.000000e-01 : f32
    %148 = vector.broadcast %cst_44 : f32 to vector<1x128xf32>
    %149 = arith.mulf %148, %145 : vector<1x128xf32>
    %cst_45 = arith.constant 0.0039682542 : f32
    %150 = vector.broadcast %cst_45 : f32 to vector<1x128xf32>
    %151 = arith.mulf %146, %150 : vector<1x128xf32>
    %cst_46 = arith.constant 0.00833333377 : f32
    %152 = vector.broadcast %cst_46 : f32 to vector<1x128xf32>
    %153 = arith.subf %152, %151 : vector<1x128xf32>
    %154 = arith.mulf %146, %153 : vector<1x128xf32>
    %cst_47 = arith.constant 0.0833333358 : f32
    %155 = vector.broadcast %cst_47 : f32 to vector<1x128xf32>
    %156 = arith.subf %155, %154 : vector<1x128xf32>
    %157 = arith.mulf %146, %156 : vector<1x128xf32>
    %158 = arith.subf %149, %157 : vector<1x128xf32>
    %cst_48 = arith.constant -5.95238118E-4 : f32
    %159 = vector.broadcast %cst_48 : f32 to vector<1x128xf32>
    %160 = arith.mulf %146, %159 : vector<1x128xf32>
    %cst_49 = arith.constant 7.93650805E-4 : f32
    %161 = vector.broadcast %cst_49 : f32 to vector<1x128xf32>
    %162 = arith.addf %161, %160 : vector<1x128xf32>
    %163 = arith.mulf %146, %162 : vector<1x128xf32>
    %cst_50 = arith.constant -0.00277777785 : f32
    %164 = vector.broadcast %cst_50 : f32 to vector<1x128xf32>
    %165 = arith.addf %164, %163 : vector<1x128xf32>
    %166 = arith.mulf %146, %165 : vector<1x128xf32>
    %cst_51 = arith.constant 0.0833333358 : f32
    %167 = vector.broadcast %cst_51 : f32 to vector<1x128xf32>
    %168 = arith.addf %167, %166 : vector<1x128xf32>
    %169 = arith.mulf %145, %168 : vector<1x128xf32>
    %170 = arith.addf %147, %158 : vector<1x128xf32>
    %171 = arith.subf %170, %142 : vector<1x128xf32>
    %cst_52 = arith.constant 5.000000e-01 : f32
    %172 = vector.broadcast %cst_52 : f32 to vector<1x128xf32>
    %173 = arith.subf %141, %172 : vector<1x128xf32>
    %174 = arith.mulf %173, %147 : vector<1x128xf32>
    %175 = arith.subf %174, %141 : vector<1x128xf32>
    %cst_53 = arith.constant 0.918938517 : f32
    %176 = vector.broadcast %cst_53 : f32 to vector<1x128xf32>
    %177 = arith.addf %175, %176 : vector<1x128xf32>
    %178 = arith.addf %177, %169 : vector<1x128xf32>
    %179 = arith.subf %178, %143 : vector<1x128xf32>
    %cst_54 = arith.constant 5.000000e-01 : f32
    %180 = vector.broadcast %cst_54 : f32 to vector<4x128xf32>
    %181 = arith.cmpf ogt, %1, %180 : vector<4x128xf32>
    %cst_55 = arith.constant 0.000000e+00 : f32
    %182 = vector.broadcast %cst_55 : f32 to vector<4x128xf32>
    %183 = arith.select %181, %182, %113 : vector<4x128xi1>, vector<4x128xf32>
    %cst_56 = arith.constant 1.000000e+00 : f32
    %184 = vector.broadcast %cst_56 : f32 to vector<4x128xf32>
    %185 = arith.subf %6, %184 : vector<4x128xf32>
    %cst_57 = arith.constant 0.000000e+00 : f32
    %186 = vector.broadcast %cst_57 : f32 to vector<4x128xf32>
    %187 = arith.select %181, %186, %185 : vector<4x128xi1>, vector<4x128xf32>
    %cst_58 = arith.constant dense<0.000000e+00> : vector<128xf32>
    %188 = vector.multi_reduction <add>, %183, %cst_58 [0] : vector<4x128xf32> to vector<128xf32>
    %189 = vector.shape_cast %188 : vector<128xf32> to vector<1x128xf32>
    %190 = arith.subf %179, %189 : vector<1x128xf32>
    %cst_59 = arith.constant 1.79175949 : f32
    %191 = vector.broadcast %cst_59 : f32 to vector<1x128xf32>
    %192 = arith.subf %190, %191 : vector<1x128xf32>
    %193 = vector.broadcast %171 : vector<1x128xf32> to vector<4x128xf32>
    %194 = arith.subf %105, %193 : vector<4x128xf32>
    %195 = arith.mulf %187, %194 : vector<4x128xf32>
    %cst_60 = arith.constant dense<0.000000e+00> : vector<128xf32>
    %196 = vector.multi_reduction <add>, %195, %cst_60 [0] : vector<4x128xf32> to vector<128xf32>
    %197 = vector.shape_cast %196 : vector<128xf32> to vector<1x128xf32>
    %198 = arith.addf %192, %197 : vector<1x128xf32>
    %199 = vector.broadcast %2 : f32 to vector<1x128xf32>
    %200 = arith.mulf %199, %198 : vector<1x128xf32>
    %201 = arith.addf %118, %200 : vector<1x128xf32>
    %c0_61 = arith.constant 0 : index
    %c0_62 = arith.constant 0 : index
    %202 = vector.load %arg4[%c0_61, %c0_62] : memref<1x128xf32, #tpu.memory_space<vmem>>, vector<1x128xf32>
    tpu.vector_store %arg4[%c0_61, %c0_62], %201 {strides = array<i32>} : memref<1x128xf32, #tpu.memory_space<vmem>>, vector<1x128xf32>,
    return
  }
  func.func @transform_0(%arg0: i32) -> i32 {
    %c0_i32 = arith.constant 0 : i32
    %c0_i32_0 = arith.constant 0 : i32
    return %c0_i32 : i32
  }
  func.func @transform_1(%arg0: i32) -> (i32, i32) {
    %c0_i32 = arith.constant 0 : i32
    %c0_i32_0 = arith.constant 0 : i32
    return %c0_i32, %arg0 : i32, i32
  }
  func.func @transform_2(%arg0: i32) -> (i32, i32) {
    %c0_i32 = arith.constant 0 : i32
    %c0_i32_0 = arith.constant 0 : i32
    return %c0_i32, %arg0 : i32, i32
  }
  func.func @transform_3(%arg0: i32) -> (i32, i32) {
    %c0_i32 = arith.constant 0 : i32
    %c0_i32_0 = arith.constant 0 : i32
    return %c0_i32, %arg0 : i32, i32
  }
}

</mosaic_0001>

<bundles_post_ra>
// kernel: tpu_custom_call.1
= control target key start
LH: loop header
LB: loop body
LE: loop exit
PB: predicated region body
PF: predicated region fallthrough
CT: control target
= control target key end

     0   :  { %9 = vsyncpa [#allocation4], 0  ;;  %s406_s0 = inlined_call_operand.<no memory space> [shape: f32[1], index: 0, kind: input, shape index: {}]   ;;  %s407_s1 = inlined_call_operand.hbm [shape: f32[4,128], index: 1, kind: input, shape index: {}]   ;;  %s408_s2 = inlined_call_operand.hbm [shape: f32[4,128], index: 2, kind: input, shape index: {}]   ;;  %s409_s3 = inlined_call_operand.hbm [shape: f32[1,128], index: 3, kind: output, shape index: {}]  }
   0x1   :  { %10 = vsyncpa [#allocation7], 0 }
   0x2   :  { %11 = vsyncpa [#allocation5], 0  ;;  %s332_s12 = smov [#allocation3]   ;;  %s333_s14 = smov [#allocation6]  }
   0x3   :  { %s20_s13 = sshll.u32 %s332_s12, 4  ;;  %s30_s15 = sshll.u32 %s333_s14, 4  ;;  %s21_s13 = int_to_ptr.vmem [resolvable:$true] %s20_s13  ;;  %s31_s15 = int_to_ptr.vmem [resolvable:$true] %s30_s15 }
   0x4   :  { %s274_s16 = scalar_lea.vmem %s21_s13, 64  ;;  %p279_p1 = scmp.lt.s32.totalorder %s21_s13, %s21_s13 }
   0x5   :  { %p275_p0 = scmp.ne.s32.totalorder %s21_s13, %s274_s16  ;;  %p280_p2 = scmp.lt.s32.totalorder %s274_s16, %s274_s16 }
   0x7   :  { %p281_p3 = por %p280_p2, %p279_p1 }
   0x9   :  { %p282_p4 = pnand %p281_p3, %p275_p0 }
   0xb   :  { %285 = shalt.err (!%p282_p4)
}
   0xc   :  { %23 = dma.hbm_to_vmem [thread:$0]  %s407_s1, 64, %s21_s13, [#allocation4]  }
   0xd   :  { %s294_s19 = scalar_lea.vmem %s31_s15, 64  ;;  %p299_p6 = scmp.lt.s32.totalorder %s31_s15, %s31_s15 }
   0xe   :  { %p295_p5 = scmp.ne.s32.totalorder %s31_s15, %s294_s19  ;;  %p300_p7 = scmp.lt.s32.totalorder %s294_s19, %s294_s19 }
  0x10   :  { %p301_p8 = por %p300_p7, %p299_p6 }
  0x12   :  { %p302_p9 = pnand %p301_p8, %p295_p5 }
  0x14   :  { %305 = shalt.err (!%p302_p9)
}
  0x15   :  { %33 = dma.hbm_to_vmem [thread:$0]  %s408_s2, 64, %s31_s15, [#allocation7]  }
  0x16   :  { %326 = dma.done.wait [#allocation4], 64  }
  0x17   :  { %327 = vsyncadd [#allocation4], 4294967232 }
  0x18   :  { %328 = dma.done.wait [#allocation7], 64  }
  0x19   :  { %329 = vsyncadd [#allocation7], 4294967232  ;;  %v40_v0 = vld [vmem:[#allocation3] sm:$0xf]  ;;  %vm45_vm0 = vcmask 1043456   ;;  %s334_s22 = smov [#allocation8]  }
  0x1a   :  { %v43_v1 = vmax.f32 %v40_v0, 0.0  ;;  %v361_v3 = vld [vmem:[#allocation6] sm:$0xf]  ;;  %s227_s23 = sshll.u32 %s334_s22, 4  ;;  %s228_s23 = int_to_ptr.vmem [resolvable:$true] %s227_s23 }
  0x1b   :  { %vm195_vm1 = vcmp.gt.f32.partialorder %v361_v3, 0.5  ;;  %s306_s24 = scalar_lea.vmem %s228_s23, 16  ;;  %s310_s25 = scalar_lea.vmem %s228_s23, 32 }
  0x1c   :  { %v44_v2 = vadd.f32 1.0, %v43_v1  ;;  %p307_p10 = scmp.ne.s32.totalorder %s228_s23, %s306_s24  ;;  %p311_p11 = scmp.lt.s32.totalorder %s228_s23, %s228_s23 }
  0x1d   :  { %p312_p12 = scmp.lt.s32.totalorder %s310_s25, %s306_s24 }
  0x1e   :  { %v46_v4 = vsel %vm45_vm0, %v44_v2, 0.0  ;;  %v80_v5 = vmul.f32 0.0, %v44_v2  ;;  %v82_v6 = vadd.f32 1.0, %v44_v2  ;;  %v364_v7 = vadd.f32 -1.0, %v44_v2 }
  0x1f   :  { %v47_v8 = vrot.slane %v46_v4, 4  ;;  %p313_p13 = por %p312_p12, %p311_p11 }
  0x20   :  { %v81_v9 = vadd.f32 1.0, %v80_v5  ;;  %v86_v10 = vadd.f32 1.0, %v82_v6  ;;  %v144_v11 = vmul.f32 %v364_v7, %v361_v3  ;;  %v85_v17 = vmul.f32 %v82_v6, %v44_v2 }
  0x21   :  { %v48_v12 = vadd.f32 %v47_v8, %v46_v4  ;;  %p314_p0 = pnand %p313_p13, %p307_p10 }
  0x22   :  { %v83_v13 = vmul.f32 %v82_v6, %v81_v9  ;;  %v90_v14 = vadd.f32 1.0, %v86_v10  ;;  %v145_v15 = vsel %vm45_vm0, %v144_v11, 0.0  ;;  %v89_v25 = vmul.f32 %v86_v10, %v85_v17 }
  0x23   :  { %v49_v16 = vrot.slane %v48_v12, 2  ;;  %v146_v18 = vrot.slane %v145_v15, 4 }
  0x24   :  { %v94_v19 = vadd.f32 1.0, %v90_v14  ;;  %v84_v21 = vadd.f32 %v83_v13, %v44_v2  ;;  %v93_v32 = vmul.f32 %v90_v14, %v89_v25 }
  0x25   :  { %v50_v20 = vadd.f32 %v49_v16, %v48_v12  ;;  %v147_v22 = vadd.f32 %v146_v18, %v145_v15 }
  0x26   :  { %v98_v23 = vadd.f32 1.0, %v94_v19  ;;  %v87_v29 = vmul.f32 %v86_v10, %v84_v21  ;;  %v97_v38 = vmul.f32 %v94_v19, %v93_v32 }
  0x27   :  { %v51_v24 = vrot.slane %v50_v20, 1  ;;  %v148_v26 = vrot.slane %v147_v22, 2 }
  0x28   :  { %v369_v27 = vadd.f32 1.0, %v98_v23  ;;  %v88_v35 = vadd.f32 %v87_v29, %v85_v17  ;;  %v101_v44 = vmul.f32 %v98_v23, %v97_v38 }
  0x29   :  { %v52_v28 = vadd.f32 %v51_v24, %v50_v20  ;;  %v149_v30 = vadd.f32 %v148_v26, %v147_v22 }
  0x2a   :  { %244 = vrcp.f32 %v369_v27  ;;  %v91_v40 = vmul.f32 %v90_v14, %v88_v35  ;;  %v237_v55 = vadd.f32 -0.5, %v369_v27 }
  0x2b   :  { %v55_v31 = vadd.f32 1.0, %v52_v28  ;;  %v150_v33 = vrot.slane %v149_v30, 1  ;;  %246 = vlog2.f32 %v369_v27  ;;  %v53_v42 = vmul.f32 0.0, %v52_v28 }
  0x2c   :  { %v92_v46 = vadd.f32 %v91_v40, %v89_v25 }
  0x2d   :  { %v59_v34 = vadd.f32 1.0, %v55_v31  ;;  %v151_v36 = vadd.f32 %v150_v33, %v149_v30  ;;  %v58_v43 = vmul.f32 %v55_v31, %v52_v28  ;;  %v54_v48 = vadd.f32 1.0, %v53_v42 }
  0x2e   :  { %v95_v51 = vmul.f32 %v94_v19, %v92_v46 }
  0x2f   :  { %v63_v37 = vadd.f32 1.0, %v59_v34  ;;  %v152_v39 = vsub.f32 %v52_v28, %v151_v36  ;;  %v62_v49 = vmul.f32 %v59_v34, %v58_v43  ;;  %v56_v56 = vmul.f32 %v55_v31, %v54_v48 }
  0x30   :  { %v96_v61 = vadd.f32 %v95_v51, %v93_v32 }
  0x31   :  { %248 = vrcp.f32 %v63_v37  ;;  %v155_v41 = vadd.f32 1.0, %v152_v39  ;;  %v153_v52 = vmul.f32 0.0, %v152_v39  ;;  %v57_v4 = vadd.f32 %v56_v56, %v52_v28 }
  0x32   :  { %250 = vlog2.f32 %v101_v44  ;;  %v99_v10 = vmul.f32 %v98_v23, %v96_v61 }
  0x33   :  { %v373_v45 = vadd.f32 1.0, %v155_v41  ;;  %252 = vrcp.f32 %v101_v44  ;;  %v380_v58 = vmul.f32 %v155_v41, %v152_v39  ;;  %v154_v62 = vadd.f32 1.0, %v153_v52 }
  0x34   :  { %254 = vlog2.f32 %v63_v37  ;;  %v60_v16 = vmul.f32 %v59_v34, %v57_v4  ;;  %v100_v24 = vadd.f32 %v99_v10, %v97_v38 }
  0x35   :  { %v376_v47 = vadd.f32 1.0, %v373_v45  ;;  %v162_v5 = vmul.f32 %v373_v45, %v380_v58  ;;  %v156_v11 = vmul.f32 %v155_v41, %v154_v62 }
  0x36   :  { %v61_v31 = vadd.f32 %v60_v16, %v58_v43 }
  0x37   :  { %v245_v50 = vpop.eup %244  ;;  %256 = vrcp.f32 %v376_v47  ;;  %v157_v25 = vadd.f32 %v156_v11, %v152_v39 }
  0x38   :  { %v247_v53 = vpop.eup %246  ;;  %v109_v54 = vmul.f32 %v245_v50, %v245_v50  ;;  %258 = vrcp.f32 %v62_v49  ;;  %v112_v19 = vmul.f32 -0.5, %v245_v50  ;;  %v239_v49 = vadd.f32 -0.5, %v376_v47 }
  0x39   :  { %v111_v57 = vmul.f32 0.6931472, %v247_v53  ;;  %260 = vlog2.f32 %v376_v47  ;;  %v160_v41 = vmul.f32 %v373_v45, %v157_v25 }
  0x3a   :  { %v113_v59 = vmul.f32 0.003968254, %v109_v54  ;;  %v119_v60 = vmul.f32 -0.0005952381, %v109_v54  ;;  %262 = vrcp.f32 %v162_v5 }
  0x3b   :  { %v129_v1 = vmul.f32 %v237_v55, %v111_v57  ;;  %264 = vlog2.f32 %v162_v5  ;;  %v161_v45 = vadd.f32 %v160_v41, %v380_v58 }
  0x3c   :  { %v114_v63 = vsub.f32 0.008333334, %v113_v59  ;;  %v120_v0 = vadd.f32 0.0007936508, %v119_v60 }
  0x3d   :  { %v130_v15 = vsub.f32 %v129_v1, %v369_v27 }
  0x3e   :  { %v249_v2 = vpop.eup %248  ;;  %v115_v8 = vmul.f32 %v114_v63, %v109_v54  ;;  %v121_v9 = vmul.f32 %v120_v0, %v109_v54 }
  0x3f   :  { %v68_v6 = vmul.f32 %v249_v2, %v249_v2  ;;  %v251_v17 = vpop.eup %250  ;;  %v131_v23 = vadd.f32 0.9189385, %v130_v15  ;;  %v69_v32 = vmul.f32 -0.5, %v249_v2 }
  0x40   :  { %v116_v13 = vsub.f32 0.083333336, %v115_v8  ;;  %v122_v14 = vadd.f32 -0.0027777778, %v121_v9  ;;  %v253_v22 = vpop.eup %252  ;;  %v106_v33 = vmul.f32 0.6931472, %v251_v17 }
  0x41   :  { %v70_v12 = vmul.f32 0.003968254, %v68_v6  ;;  %v255_v26 = vpop.eup %254  ;;  %v104_v40 = vmul.f32 %v253_v22, %v100_v24 }
  0x42   :  { %v117_v20 = vmul.f32 %v116_v13, %v109_v54  ;;  %v123_v21 = vmul.f32 %v122_v14, %v109_v54  ;;  %v77_v42 = vmul.f32 0.6931472, %v255_v26  ;;  %v197_v26 = vsel %vm195_vm1, 0.0, %v364_v7 }
  0x43   :  { %v71_v18 = vsub.f32 0.008333334, %v70_v12 }
  0x44   :  { %v124_v29 = vadd.f32 0.083333336, %v123_v21  ;;  %v257_v30 = vpop.eup %256  ;;  %v118_v34 = vsub.f32 %v112_v19, %v117_v20 }
  0x45   :  { %v72_v28 = vmul.f32 %v71_v18, %v68_v6  ;;  %v259_v35 = vpop.eup %258  ;;  %v170_v37 = vmul.f32 %v257_v30, %v257_v30  ;;  %v173_v61 = vmul.f32 -0.5, %v257_v30 }
  0x46   :  { %v125_v36 = vmul.f32 %v245_v50, %v124_v29  ;;  %v261_v38 = vpop.eup %260  ;;  %v65_v48 = vmul.f32 %v259_v35, %v61_v31  ;;  %v126_v52 = vadd.f32 %v118_v34, %v111_v57 }
  0x47   :  { %v73_v27 = vsub.f32 0.083333336, %v72_v28  ;;  %v174_v46 = vmul.f32 0.003968254, %v170_v37  ;;  %v180_v43 = vmul.f32 -0.0005952381, %v170_v37  ;;  %v263_v1 = vpop.eup %262 }
  0x48   :  { %v132_v44 = vadd.f32 %v131_v23, %v125_v36  ;;  %v172_v54 = vmul.f32 0.6931472, %v261_v38  ;;  %v127_v4 = vsub.f32 %v126_v52, %v104_v40  ;;  %v165_v13 = vmul.f32 %v263_v1, %v161_v45  ;;  %v265_v24 = vpop.eup %264 }
  0x49   :  { %v74_v39 = vmul.f32 %v73_v27, %v68_v6  ;;  %v175_v50 = vsub.f32 0.008333334, %v174_v46  ;;  %v181_v55 = vadd.f32 0.0007936508, %v180_v43  ;;  %v167_v29 = vmul.f32 0.6931472, %v265_v24 }
  0x4a   :  { %v133_v53 = vsub.f32 %v132_v44, %v106_v33  ;;  %v190_v63 = vmul.f32 %v239_v49, %v172_v54  ;;  %v217_v44 = vstv %s406_s0 }
  0x4b   :  { %v75_v51 = vsub.f32 %v69_v32, %v74_v39  ;;  %v176_v59 = vmul.f32 %v175_v50, %v170_v37  ;;  %v182_v62 = vmul.f32 %v181_v55, %v170_v37 }
  0x4c   :  { %v196_v60 = vsel %vm195_vm1, 0.0, %v133_v53  ;;  %v191_v58 = vsub.f32 %v190_v63, %v376_v47 }
  0x4d   :  { %v78_v56 = vadd.f32 %v77_v42, %v75_v51  ;;  %v198_v0 = vsel %vm45_vm0, %v196_v60, 0.0  ;;  %v177_v57 = vsub.f32 0.083333336, %v176_v59  ;;  %v183_v6 = vadd.f32 -0.0027777778, %v182_v62 }
  0x4e   :  { %v199_v5 = vrot.slane %v198_v0, 4  ;;  %v192_v21 = vadd.f32 0.9189385, %v191_v58 }
  0x4f   :  { %v79_v2 = vsub.f32 %v78_v56, %v65_v48  ;;  %v178_v9 = vmul.f32 %v177_v57, %v170_v37  ;;  %v184_v11 = vmul.f32 %v183_v6, %v170_v37 }
  0x50   :  { %v200_v10 = vadd.f32 %v199_v5, %v198_v0 }
  0x51   :  { %v134_v8 = vsub.f32 %v79_v2, %v127_v4  ;;  %v179_v14 = vsub.f32 %v173_v61, %v178_v9  ;;  %v185_v16 = vadd.f32 0.083333336, %v184_v11 }
  0x52   :  { %v201_v15 = vrot.slane %v200_v10, 2 }
  0x53   :  { %v135_v12 = vmul.f32 %v134_v8, %v361_v3  ;;  %v187_v18 = vadd.f32 %v179_v14, %v172_v54  ;;  %v186_v20 = vmul.f32 %v257_v30, %v185_v16 }
  0x54   :  { %v202_v22 = vadd.f32 %v201_v15, %v200_v10 }
  0x55   :  { %v136_v17 = vsel %vm45_vm0, %v135_v12, 0.0  ;;  %v188_v25 = vsub.f32 %v187_v18, %v165_v13  ;;  %v193_v23 = vadd.f32 %v192_v21, %v186_v20 }
  0x56   :  { %v137_v19 = vrot.slane %v136_v17, 4  ;;  %v203_v31 = vrot.slane %v202_v22, 1 }
  0x57   :  { %v207_v47 = vsub.f32 %v127_v4, %v188_v25  ;;  %v194_v27 = vsub.f32 %v193_v23, %v167_v29 }
  0x58   :  { %v138_v28 = vadd.f32 %v137_v19, %v136_v17  ;;  %v204_v34 = vadd.f32 %v203_v31, %v202_v22 }
  0x59   :  { %v208_v32 = vmul.f32 %v207_v47, %v197_v26 }
  0x5a   :  { %v139_v35 = vrot.slane %v138_v28, 2  ;;  %v205_v40 = vsub.f32 %v194_v27, %v204_v34 }
  0x5b   :  { %v209_v33 = vsel %vm45_vm0, %v208_v32, 0.0 }
  0x5c   :  { %v210_v30 = vrot.slane %v209_v33, 4  ;;  %v140_v37 = vadd.f32 %v139_v35, %v138_v28  ;;  %v240_v3 = vadd.f32 -1.7917595, %v205_v40 }
  0x5e   :  { %v211_v36 = vadd.f32 %v210_v30, %v209_v33  ;;  %v141_v39 = vrot.slane %v140_v37, 1 }
  0x60   :  { %v212_v41 = vrot.slane %v211_v36, 2  ;;  %v142_v46 = vadd.f32 %v141_v39, %v140_v37 }
  0x62   :  { %v213_v38 = vadd.f32 %v212_v41, %v211_v36 }
  0x64   :  { %v214_v7 = vrot.slane %v213_v38, 1 }
  0x66   :  { %v215_v42 = vadd.f32 %v214_v7, %v213_v38 }
  0x68   :  { %v216_v48 = vadd.f32 %v240_v3, %v215_v42 }
  0x6a   :  { %v218_v43 = vmul.f32 %v217_v44, %v216_v48 }
  0x6c   :  { %v219_v49 = vadd.f32 %v218_v43, %v142_v46 }
  0x6e   :  { %220 = vst [vmem:[#allocation8] sm:$0x1] %v219_v49 }
  0x6f   :  { %317 = shalt.err (!%p314_p0)
}
  0x70   :  { %230 = dma.vmem_to_hbm [thread:$0]  %s228_s23, 16, %s409_s3, [#allocation5]  }
  0x71   :  { %330 = dma.done.wait [#allocation5], 16  }
  0x72   :  { %331 = vsyncadd [#allocation5], 4294967280 }
  0x73   :  { %234 = vsyncpa [#allocation4], 1 }
  0x74   :  { %235 = vsyncpa [#allocation7], 1 }
  0x75   :  { %236 = vsyncpa [#allocation5], 1 }

</bundles_post_ra>
